<compile_context>
chip_gen: v7x
topology: tpu7x:2x2x1
jax: 0.10.0
libtpu: 0.0.40
codegen_flags: <defaults>
</compile_context>

<pallas_src>
import functools

import jax
import jax.numpy as jnp
from jax.experimental import pallas as pl
from jax.experimental.pallas import tpu as pltpu

EPS = 1e-5
LANE = 128


def _round_up(n, m=LANE):
    return ((n + m - 1) // m) * m


def mlp_kernel(x_ref, w1_ref, w2_ref, w3_ref, vec_ref, hid_ref, out_ref,
               *, h1p, h2p, opd):
    x = x_ref[...]                      # (B, in)  bf16
    vec = vec_ref[...]                  # (8, W)   f32: b1,g1,be1,b2,g2,be2,b3,0

    def relu_bn(h, g, be):
        # ReLU then BatchNorm1d (training mode: batch mean, biased variance),
        # with the affine fused into one scale/shift (rsqrt -> EUP slot).
        h = jnp.maximum(h, 0.0)
        mu = jnp.mean(h, axis=0, keepdims=True)
        c = h - mu
        var = jnp.mean(c * c, axis=0, keepdims=True)
        scale = g * jax.lax.rsqrt(var + EPS)
        shift = be - mu * scale
        return h * scale + shift

    # ---- hidden layer 1: Linear -> ReLU -> BatchNorm1d ----
    h = jnp.dot(x, w1_ref[...], preferred_element_type=jnp.float32) + vec[0:1, :h1p]
    h = relu_bn(h, vec[1:2, :h1p], vec[2:3, :h1p])

    # ---- hidden layer 2: Linear -> ReLU -> BatchNorm1d ----
    h2 = jnp.dot(h.astype(jnp.bfloat16), w2_ref[...],
                 preferred_element_type=jnp.float32) + vec[3:4, :h2p]
    h2 = relu_bn(h2, vec[4:5, :h2p], vec[5:6, :h2p])

    # ---- output layer ----
    out = jnp.dot(h2.astype(jnp.bfloat16), w3_ref[...],
                  preferred_element_type=jnp.float32) + vec[6:7, :opd]

    # Lane-dense (>=128-wide, 128-aligned) unmasked stores.
    hid_ref[...] = h2
    out_ref[...] = out


def pack_params(params, input_size, hidden_sizes, output_size):
    """One-time (host/setup-side) padding + packing of the parameters.

    Returns (w1p, w2p, w3p, vec) where weights are bf16 zero-padded to
    128-lane multiples and vec is the (8, W) f32 slab
    [b1; g1; be1; b2; g2; be2; b3; 0] (padded lanes are zero -- required).
    """
    (w1, b1, g1, be1, w2, b2, g2, be2, w3, b3) = params
    h1, h2 = hidden_sizes
    h1p, h2p, opd = _round_up(h1), _round_up(h2), _round_up(output_size)
    W = max(h1p, h2p, opd)

    def pad_n(a, n_to):       # zero-pad last (lane) dim
        return jnp.pad(a, ((0, 0), (0, n_to - a.shape[1])))

    def pad_m(a, m_to):       # zero-pad first dim
        return jnp.pad(a, ((0, m_to - a.shape[0]), (0, 0)))

    # Zero-padded weights: padded rows/cols contribute exact zeros.
    w1p = pad_n(w1, h1p).astype(jnp.bfloat16)                 # (in,  h1p)
    w2p = pad_n(pad_m(w2, h1p), h2p).astype(jnp.bfloat16)     # (h1p, h2p)
    w3p = pad_n(pad_m(w3, h2p), opd).astype(jnp.bfloat16)     # (h2p, opd)

    def vrow(v):
        return pad_n(v.reshape(1, -1).astype(jnp.float32), W)

    vec = jnp.concatenate(
        [vrow(b1), vrow(g1), vrow(be1),
         vrow(b2), vrow(g2), vrow(be2),
         vrow(b3),
         jnp.zeros((1, W), jnp.float32)],
        axis=0,
    )
    return w1p, w2p, w3p, vec


@functools.partial(jax.jit, static_argnames=("hidden_sizes", "output_size"))
def mlp_forward(x, packed, hidden_sizes, output_size):
    """x: (B, ...) -> (output (B, output_size), final_hidden (B, hidden_sizes[-1]))."""
    w1p, w2p, w3p, vec = packed
    B = x.shape[0]
    xf = x.reshape(B, -1).astype(jnp.bfloat16)   # torch's x.view(B, -1) + bf16 MXU feed
    in_size = xf.shape[1]

    h1, h2 = hidden_sizes
    h1p, h2p, opd = w1p.shape[1], w2p.shape[1], w3p.shape[1]

    flops = 2 * B * (in_size * h1p + h1p * h2p + h2p * opd)
    bytes_accessed = (2 * (xf.size + w1p.size + w2p.size + w3p.size)   # bf16
                      + 4 * (vec.size + B * (h2p + opd)))              # f32
    cost = pl.CostEstimate(flops=flops,
                           transcendentals=h1p + h2p,
                           bytes_accessed=bytes_accessed)

    vmem = pl.BlockSpec(memory_space=pltpu.MemorySpace.VMEM)
    hid_pad, out_pad = pl.pallas_call(
        functools.partial(mlp_kernel, h1p=h1p, h2p=h2p, opd=opd),
        out_shape=(jax.ShapeDtypeStruct((B, h2p), jnp.float32),
                   jax.ShapeDtypeStruct((B, opd), jnp.float32)),
        in_specs=[vmem] * 5,
        out_specs=(vmem, vmem),
        compiler_params=pltpu.CompilerParams(vmem_limit_bytes=32 * 1024 * 1024),
        cost_estimate=cost,
    )(xf, w1p, w2p, w3p, vec)

    hidden = hid_pad if h2p == h2 else hid_pad[:, :h2]
    output = out_pad if opd == output_size else out_pad[:, :output_size]
    return output, hidden


def mlp_reference(x, params, *, bf16_dots=True):
    """Pure-JAX reference (same training-mode BN semantics).

    With bf16_dots=True the matmul inputs are cast to bf16 (f32 accumulation),
    matching the kernel's intended numerics exactly; bf16_dots=False is the
    full-f32 torch semantics (kernel differs from it only by bf16 matmul
    rounding).
    """
    B = x.shape[0]
    h = x.reshape(B, -1).astype(jnp.float32)
    (w1, b1, g1, be1, w2, b2, g2, be2, w3, b3) = params

    def dot(a, w):
        if bf16_dots:
            return jnp.dot(a.astype(jnp.bfloat16), w.astype(jnp.bfloat16),
                           preferred_element_type=jnp.float32)
        return a @ w

    def block(h, w, b, g, be):
        h = jnp.maximum(dot(h, w) + b, 0.0)
        mu = jnp.mean(h, axis=0, keepdims=True)
        var = jnp.mean((h - mu) ** 2, axis=0, keepdims=True)
        return (h - mu) / jnp.sqrt(var + EPS) * g + be

    h = block(h, w1, b1, g1, be1)
    h = block(h, w2, b2, g2, be2)
    return dot(h, w3) + b3, h


def init_params(key, input_size, hidden_sizes, output_size):
    """Deterministic synthetic init (shapes mirror torch.nn.Linear / BatchNorm1d)."""
    params = []
    prev = input_size
    ks = jax.random.split(key, 2 * len(hidden_sizes) + 2)
    ki = 0
    for size in hidden_sizes:
        scale = 1.0 / jnp.sqrt(prev)
        w = jax.random.uniform(ks[ki], (prev, size), jnp.float32, -scale, scale); ki += 1
        b = jax.random.uniform(ks[ki], (1, size), jnp.float32, -scale, scale); ki += 1
        gamma = jnp.ones((1, size), jnp.float32)    # BatchNorm1d weight init
        beta = jnp.zeros((1, size), jnp.float32)    # BatchNorm1d bias init
        params += [w, b, gamma, beta]
        prev = size
    scale = 1.0 / jnp.sqrt(prev)
    w_out = jax.random.uniform(ks[ki], (prev, output_size), jnp.float32, -scale, scale); ki += 1
    b_out = jax.random.uniform(ks[ki], (1, output_size), jnp.float32, -scale, scale)
    params += [w_out, b_out]
    return tuple(params)


if __name__ == "__main__":
    # Small shapes consistent with the module defaults: batch=8 (multiple of 8
    # sublanes so BN batch stats stay in one vreg column), input (4,4,2) -> 32
    # flattened features, hidden_sizes=(512, 256) (module defaults, lane-dense),
    # output 16 (padded to 128 in-kernel).
    key = jax.random.PRNGKey(0)
    kx, kp = jax.random.split(key)

    batch = 8
    input_shape = (4, 4, 2)
    input_size = 4 * 4 * 2
    hidden_sizes = (512, 256)
    output_size = 16

    x = jax.random.normal(kx, (batch,) + input_shape, jnp.float32)
    params = init_params(kp, input_size, hidden_sizes, output_size)

    # One-time packing (hoisted out of the per-call path).
    packed = pack_params(params, input_size, hidden_sizes, output_size)

    out, hidden = mlp_forward(x, packed, hidden_sizes, output_size)
    jax.block_until_ready((out, hidden))

    assert out.shape == (batch, output_size)
    assert hidden.shape == (batch, hidden_sizes[-1])

    # Tight check against the bf16-matmul reference (same intended numerics).
    out_ref, hid_ref = mlp_reference(x, params, bf16_dots=True)
    assert bool(jnp.allclose(out, out_ref, rtol=2e-3, atol=2e-3))
    assert bool(jnp.allclose(hidden, hid_ref, rtol=2e-3, atol=2e-3))

    print("KERNEL_OK")
</pallas_src>

<mosaic_0001>
module attributes {stable_mosaic.version = 11 : i64} {
  func.func @mlp_kernel(%arg0: memref<8x32xbf16, #tpu.memory_space<vmem>>, %arg1: memref<32x512xbf16, #tpu.memory_space<vmem>>, %arg2: memref<512x256xbf16, #tpu.memory_space<vmem>>, %arg3: memref<256x128xbf16, #tpu.memory_space<vmem>>, %arg4: memref<8x512xf32, #tpu.memory_space<vmem>>, %arg5: memref<8x256xf32, #tpu.memory_space<vmem>>, %arg6: memref<8x128xf32, #tpu.memory_space<vmem>>) attributes {dimension_semantics = [], scalar_prefetch = 0 : i64, scratch_operands = 0 : i64, tpu.core_type = #tpu.core_type<tc>} {
    %c0 = arith.constant 0 : index
    %c0_0 = arith.constant 0 : index
    %0 = vector.load %arg0[%c0, %c0_0] : memref<8x32xbf16, #tpu.memory_space<vmem>>, vector<8x32xbf16>
    %c0_1 = arith.constant 0 : index
    %c0_2 = arith.constant 0 : index
    %1 = vector.load %arg4[%c0_1, %c0_2] : memref<8x512xf32, #tpu.memory_space<vmem>>, vector<8x512xf32>
    %c0_3 = arith.constant 0 : index
    %c0_4 = arith.constant 0 : index
    %2 = vector.load %arg1[%c0_3, %c0_4] : memref<32x512xbf16, #tpu.memory_space<vmem>>, vector<32x512xbf16>
    %cst = arith.constant dense<0.000000e+00> : vector<8x512xf32>
    %3 = tpu.matmul %0, %2, %cst {dimension_numbers = #tpu.dot_dimension_numbers<[1], [0], [0], [1], [0, 0, 1, 1], [], []>} : vector<8x32xbf16>, vector<32x512xbf16>, vector<8x512xf32> -> vector<8x512xf32>
    %4 = vector.extract_strided_slice %1 {offsets = [0, 0], sizes = [1, 512], strides = [1, 1]} : vector<8x512xf32> to vector<1x512xf32>
    %5 = vector.broadcast %4 : vector<1x512xf32> to vector<8x512xf32>
    %6 = arith.addf %3, %5 : vector<8x512xf32>
    %7 = vector.extract_strided_slice %1 {offsets = [1, 0], sizes = [1, 512], strides = [1, 1]} : vector<8x512xf32> to vector<1x512xf32>
    %8 = vector.extract_strided_slice %1 {offsets = [2, 0], sizes = [1, 512], strides = [1, 1]} : vector<8x512xf32> to vector<1x512xf32>
    %cst_5 = arith.constant 0.000000e+00 : f32
    %9 = vector.broadcast %cst_5 : f32 to vector<8x512xf32>
    %10 = arith.maximumf %6, %9 : vector<8x512xf32>
    %cst_6 = arith.constant dense<0.000000e+00> : vector<512xf32>
    %11 = vector.multi_reduction <add>, %10, %cst_6 [0] : vector<8x512xf32> to vector<512xf32>
    %12 = vector.shape_cast %11 : vector<512xf32> to vector<1x512xf32>
    %cst_7 = arith.constant 8.000000e+00 : f32
    %13 = vector.broadcast %cst_7 : f32 to vector<1x512xf32>
    %14 = arith.divf %12, %13 : vector<1x512xf32>
    %15 = vector.broadcast %14 : vector<1x512xf32> to vector<8x512xf32>
    %16 = arith.subf %10, %15 : vector<8x512xf32>
    %17 = arith.mulf %16, %16 : vector<8x512xf32>
    %cst_8 = arith.constant dense<0.000000e+00> : vector<512xf32>
    %18 = vector.multi_reduction <add>, %17, %cst_8 [0] : vector<8x512xf32> to vector<512xf32>
    %19 = vector.shape_cast %18 : vector<512xf32> to vector<1x512xf32>
    %cst_9 = arith.constant 8.000000e+00 : f32
    %20 = vector.broadcast %cst_9 : f32 to vector<1x512xf32>
    %21 = arith.divf %19, %20 : vector<1x512xf32>
    %cst_10 = arith.constant 9.99999974E-6 : f32
    %22 = vector.broadcast %cst_10 : f32 to vector<1x512xf32>
    %23 = arith.addf %21, %22 : vector<1x512xf32>
    %24 = math.rsqrt %23 : vector<1x512xf32>
    %25 = arith.mulf %7, %24 : vector<1x512xf32>
    %26 = arith.mulf %14, %25 : vector<1x512xf32>
    %27 = arith.subf %8, %26 : vector<1x512xf32>
    %28 = vector.broadcast %25 : vector<1x512xf32> to vector<8x512xf32>
    %29 = arith.mulf %10, %28 : vector<8x512xf32>
    %30 = vector.broadcast %27 : vector<1x512xf32> to vector<8x512xf32>
    %31 = arith.addf %29, %30 : vector<8x512xf32>
    %32 = arith.truncf %31 : vector<8x512xf32> to vector<8x512xbf16>
    %c0_11 = arith.constant 0 : index
    %c0_12 = arith.constant 0 : index
    %33 = vector.load %arg2[%c0_11, %c0_12] : memref<512x256xbf16, #tpu.memory_space<vmem>>, vector<512x256xbf16>
    %cst_13 = arith.constant dense<0.000000e+00> : vector<8x256xf32>
    %34 = tpu.matmul %32, %33, %cst_13 {dimension_numbers = #tpu.dot_dimension_numbers<[1], [0], [0], [1], [0, 0, 1, 1], [], []>} : vector<8x512xbf16>, vector<512x256xbf16>, vector<8x256xf32> -> vector<8x256xf32>
    %35 = vector.extract_strided_slice %1 {offsets = [3, 0], sizes = [1, 256], strides = [1, 1]} : vector<8x512xf32> to vector<1x256xf32>
    %36 = vector.broadcast %35 : vector<1x256xf32> to vector<8x256xf32>
    %37 = arith.addf %34, %36 : vector<8x256xf32>
    %38 = vector.extract_strided_slice %1 {offsets = [4, 0], sizes = [1, 256], strides = [1, 1]} : vector<8x512xf32> to vector<1x256xf32>
    %39 = vector.extract_strided_slice %1 {offsets = [5, 0], sizes = [1, 256], strides = [1, 1]} : vector<8x512xf32> to vector<1x256xf32>
    %cst_14 = arith.constant 0.000000e+00 : f32
    %40 = vector.broadcast %cst_14 : f32 to vector<8x256xf32>
    %41 = arith.maximumf %37, %40 : vector<8x256xf32>
    %cst_15 = arith.constant dense<0.000000e+00> : vector<256xf32>
    %42 = vector.multi_reduction <add>, %41, %cst_15 [0] : vector<8x256xf32> to vector<256xf32>
    %43 = vector.shape_cast %42 : vector<256xf32> to vector<1x256xf32>
    %cst_16 = arith.constant 8.000000e+00 : f32
    %44 = vector.broadcast %cst_16 : f32 to vector<1x256xf32>
    %45 = arith.divf %43, %44 : vector<1x256xf32>
    %46 = vector.broadcast %45 : vector<1x256xf32> to vector<8x256xf32>
    %47 = arith.subf %41, %46 : vector<8x256xf32>
    %48 = arith.mulf %47, %47 : vector<8x256xf32>
    %cst_17 = arith.constant dense<0.000000e+00> : vector<256xf32>
    %49 = vector.multi_reduction <add>, %48, %cst_17 [0] : vector<8x256xf32> to vector<256xf32>
    %50 = vector.shape_cast %49 : vector<256xf32> to vector<1x256xf32>
    %cst_18 = arith.constant 8.000000e+00 : f32
    %51 = vector.broadcast %cst_18 : f32 to vector<1x256xf32>
    %52 = arith.divf %50, %51 : vector<1x256xf32>
    %cst_19 = arith.constant 9.99999974E-6 : f32
    %53 = vector.broadcast %cst_19 : f32 to vector<1x256xf32>
    %54 = arith.addf %52, %53 : vector<1x256xf32>
    %55 = math.rsqrt %54 : vector<1x256xf32>
    %56 = arith.mulf %38, %55 : vector<1x256xf32>
    %57 = arith.mulf %45, %56 : vector<1x256xf32>
    %58 = arith.subf %39, %57 : vector<1x256xf32>
    %59 = vector.broadcast %56 : vector<1x256xf32> to vector<8x256xf32>
    %60 = arith.mulf %41, %59 : vector<8x256xf32>
    %61 = vector.broadcast %58 : vector<1x256xf32> to vector<8x256xf32>
    %62 = arith.addf %60, %61 : vector<8x256xf32>
    %63 = arith.truncf %62 : vector<8x256xf32> to vector<8x256xbf16>
    %c0_20 = arith.constant 0 : index
    %c0_21 = arith.constant 0 : index
    %64 = vector.load %arg3[%c0_20, %c0_21] : memref<256x128xbf16, #tpu.memory_space<vmem>>, vector<256x128xbf16>
    %cst_22 = arith.constant dense<0.000000e+00> : vector<8x128xf32>
    %65 = tpu.matmul %63, %64, %cst_22 {dimension_numbers = #tpu.dot_dimension_numbers<[1], [0], [0], [1], [0, 0, 1, 1], [], []>} : vector<8x256xbf16>, vector<256x128xbf16>, vector<8x128xf32> -> vector<8x128xf32>
    %66 = vector.extract_strided_slice %1 {offsets = [6, 0], sizes = [1, 128], strides = [1, 1]} : vector<8x512xf32> to vector<1x128xf32>
    %67 = vector.broadcast %66 : vector<1x128xf32> to vector<8x128xf32>
    %68 = arith.addf %65, %67 : vector<8x128xf32>
    %c0_23 = arith.constant 0 : index
    %c0_24 = arith.constant 0 : index
    %69 = vector.load %arg5[%c0_23, %c0_24] : memref<8x256xf32, #tpu.memory_space<vmem>>, vector<8x256xf32>
    tpu.vector_store %arg5[%c0_23, %c0_24], %62 {strides = array<i32>} : memref<8x256xf32, #tpu.memory_space<vmem>>, vector<8x256xf32>,
    %c0_25 = arith.constant 0 : index
    %c0_26 = arith.constant 0 : index
    %70 = vector.load %arg6[%c0_25, %c0_26] : memref<8x128xf32, #tpu.memory_space<vmem>>, vector<8x128xf32>
    tpu.vector_store %arg6[%c0_25, %c0_26], %68 {strides = array<i32>} : memref<8x128xf32, #tpu.memory_space<vmem>>, vector<8x128xf32>,
    return
  }
}

</mosaic_0001>

<bundles_post_ra>
// kernel: mlp_forward.1
= control target key start
LH: loop header
LB: loop body
LE: loop exit
PB: predicated region body
PF: predicated region fallthrough
CT: control target
= control target key end

     0   :  { %12 = vsyncpa [#allocation3], 0  ;;  %s1687_s0 = inlined_call_operand.vmem [shape: bf16[8,32], index: 0, kind: input, shape index: {}]   ;;  %s1688_s1 = inlined_call_operand.vmem [shape: bf16[32,512], index: 1, kind: input, shape index: {}]   ;;  %s1689_s2 = inlined_call_operand.hbm [shape: bf16[512,256], index: 2, kind: input, shape index: {}]   ;;  %s1690_s3 = inlined_call_operand.hbm [shape: bf16[256,128], index: 3, kind: input, shape index: {}]   ;;  %s1691_s4 = inlined_call_operand.hbm [shape: f32[8,512], index: 4, kind: input, shape index: {}]   ;;  %s1692_s5 = inlined_call_operand.hbm [shape: f32[8,256], index: 5, kind: output, shape index: {0}]   ;;  %s1693_s6 = inlined_call_operand.hbm [shape: f32[8,128], index: 6, kind: output, shape index: {1}]  }
   0x1   :  { %13 = vsyncpa [#allocation6], 0 }
   0x2   :  { %14 = vsyncpa [#allocation4], 0 }
   0x3   :  { %15 = vsyncpa [#allocation10], 0  ;;  %s1495_s21 = smov [#allocation5]   ;;  %s1377_s25 = scalar_lea.hbm %s1690_s3, 2048 }
   0x4   :  { %s37_s22 = sshll.u32 %s1495_s21, 4  ;;  %p1378_p0 = scmp.ne.s32.totalorder %s1690_s3, %s1377_s25  ;;  %s38_s22 = int_to_ptr.vmem [resolvable:$true] %s37_s22 }
   0x5   :  { %p1381_p1 = scmp.lt.u32.totalorder %s1377_s25, %s1690_s3 }
   0x7   :  { %p1383_p2 = pnand %p1381_p1, %p1378_p0 }
   0x9   :  { %1386 = shalt.err (!%p1383_p2)
}
   0xa   :  { %s1387_s30 = scalar_lea.vmem %s38_s22, 2048  ;;  %p1392_p4 = scmp.lt.s32.totalorder %s38_s22, %s38_s22 }
   0xb   :  { %p1388_p3 = scmp.ne.s32.totalorder %s38_s22, %s1387_s30  ;;  %p1393_p5 = scmp.lt.s32.totalorder %s1387_s30, %s1387_s30 }
   0xd   :  { %p1394_p6 = por %p1393_p5, %p1392_p4 }
   0xf   :  { %p1395_p7 = pnand %p1394_p6, %p1388_p3 }
  0x11   :  { %1398 = shalt.err (!%p1395_p7)
}
  0x12   :  { %s1496_s7 = smov 64   ;;  %s1497_s8 = smov 4  }
  0x13   :  { %43 = dma.hbm_to_vmem [thread:$0]  %s1690_s3, 2048, %s38_s22, [#allocation6], %s1496_s7, %s1496_s7, %s1497_s8  }
  0x14   :  { %s1498_s11 = smov [#allocation2]   ;;  %s1399_s15 = scalar_lea.hbm %s1689_s2, 8192 }
  0x15   :  { %s25_s12 = sshll.u32 %s1498_s11, 4  ;;  %p1400_p8 = scmp.ne.s32.totalorder %s1689_s2, %s1399_s15  ;;  %s26_s12 = int_to_ptr.vmem [resolvable:$true] %s25_s12 }
  0x16   :  { %p1403_p9 = scmp.lt.u32.totalorder %s1399_s15, %s1689_s2 }
  0x18   :  { %p1405_p10 = pnand %p1403_p9, %p1400_p8 }
  0x1a   :  { %1408 = shalt.err (!%p1405_p10)
}
  0x1b   :  { %s1409_s20 = scalar_lea.vmem %s26_s12, 8192  ;;  %p1414_p12 = scmp.lt.s32.totalorder %s26_s12, %s26_s12 }
  0x1c   :  { %p1410_p11 = scmp.ne.s32.totalorder %s26_s12, %s1409_s20  ;;  %p1415_p13 = scmp.lt.s32.totalorder %s1409_s20, %s1409_s20 }
  0x1e   :  { %p1416_p0 = por %p1415_p13, %p1414_p12 }
  0x20   :  { %p1417_p1 = pnand %p1416_p0, %p1410_p11 }
  0x22   :  { %1420 = shalt.err (!%p1417_p1)
}
  0x23   :  { %s1499_s3 = smov 128   ;;  %s1500_s21 = smov 8  }
  0x24   :  { %31 = dma.hbm_to_vmem [thread:$0]  %s1689_s2, 8192, %s26_s12, [#allocation3], %s1499_s3, %s1499_s3, %s1500_s21  }
  0x25   :  { %s1501_s24 = smov [#allocation7]   ;;  %s1421_s28 = scalar_lea.hbm %s1691_s4, 512 }
  0x26   :  { %s50_s25 = sshll.u32 %s1501_s24, 4  ;;  %p1422_p2 = scmp.ne.s32.totalorder %s1691_s4, %s1421_s28  ;;  %s51_s25 = int_to_ptr.vmem [resolvable:$true] %s50_s25 }
  0x27   :  { %p1425_p3 = scmp.lt.u32.totalorder %s1421_s28, %s1691_s4 }
  0x29   :  { %p1427_p4 = pnand %p1425_p3, %p1422_p2 }
  0x2b   :  { %1430 = shalt.err (!%p1427_p4)
}
  0x2c   :  { %s1431_s9 = scalar_lea.vmem %s51_s25, 512  ;;  %p1436_p6 = scmp.lt.s32.totalorder %s51_s25, %s51_s25 }
  0x2d   :  { %p1432_p5 = scmp.ne.s32.totalorder %s51_s25, %s1431_s9  ;;  %p1437_p7 = scmp.lt.s32.totalorder %s1431_s9, %s1431_s9 }
  0x2f   :  { %p1438_p8 = por %p1437_p7, %p1436_p6 }
  0x31   :  { %p1439_p9 = pnand %p1438_p8, %p1432_p5 }
  0x33   :  { %1442 = shalt.err (!%p1439_p9)
}
  0x34   :  { %53 = dma.hbm_to_vmem [thread:$0]  %s1691_s4, 512, %s51_s25, [#allocation6]  }
  0x35   :  { %1487 = dma.done.wait [#allocation3], 8192  }
  0x36   :  { %1488 = vsyncadd [#allocation3], 4294959104 }
  0x37   :  { %1489 = dma.done.wait [#allocation6], 2560  }
  0x38   :  { %1490 = vsyncadd [#allocation6], 4294964736  ;;  %v1502_v0 = vmov 0   ;;  %v1241_v1 = vld [vmem:[%s1688_s1 + $0x4] ss:$16 sps:$4 sm:$0xff]   ;;  %vm133_vm0 = vcmask 261120  }
  0x39   :  { %169 = vmatprep.mubr.bf16.mxu0 %v1502_v0  ;;  %v1243_v2 = vld [vmem:[%s1688_s1] ss:$16 sps:$4 sm:$0xff]   ;;  %137 = vmatprep.subr.bf16.mxu0 %v1241_v1  ;;  %v1244_v3 = vld [vmem:[%s1688_s1 + $0x24] ss:$16 sps:$4 sm:$0xff]   ;;  %v1249_v5 = vld [vmem:[%s1688_s1 + $0xc] ss:$16 sps:$4 sm:$0xff]  }
  0x3a   :  { %138 = vmatpush1.bf16.msra.mxu0 %v1243_v2  ;;  %v1246_v4 = vld [vmem:[%s1688_s1 + $0x20] ss:$16 sps:$4 sm:$0xff]   ;;  %v1247_v7 = vld [vmem:[%s1688_s1 + $0x8] ss:$16 sps:$4 sm:$0xff]   ;;  %v1252_v8 = vld [vmem:[%s1688_s1 + $0x2c] ss:$16 sps:$4 sm:$0xff]  }
  0x3b   :  { %139 = vmatprep.subr.bf16.mxu0 %v1244_v3  ;;  %v64_v6 = vld [vmem:[%s1687_s0] sm:$0xf]  ;;  %v1250_v9 = vld [vmem:[%s1688_s1 + $0x28] ss:$16 sps:$4 sm:$0xff]   ;;  %v1253_v10 = vld [vmem:[#allocation2 + $0x4] ss:$8 sps:$4 sm:$0xff]  }
  0x3c   :  { %v1255_v11 = vld [vmem:[#allocation2] ss:$8 sps:$4 sm:$0xff]   ;;  %756 = vmatprep.subr.bf16.mxu1 %v1253_v10  ;;  %v1256_v12 = vld [vmem:[#allocation2 + $0x14] ss:$8 sps:$4 sm:$0xff]   ;;  %v1258_v13 = vld [vmem:[#allocation2 + $0x10] ss:$8 sps:$4 sm:$0xff]   ;;  %v77_v10 = vlaneseq }
  0x3d   :  { %757 = vmatpush1.bf16.msra.mxu1 %v1255_v11  ;;  %v1259_v14 = vld [vmem:[#allocation2 + $0x24] ss:$8 sps:$4 sm:$0xff]   ;;  %v1261_v16 = vld [vmem:[#allocation2 + $0x100] ss:$8 sps:$4 sm:$0xff]   ;;  %v1265_v18 = vld [vmem:[#allocation2 + $0x34] ss:$8 sps:$4 sm:$0xff]  }
  0x3e   :  { %140 = vmatpush1.bf16.msra.mxu0 %v1246_v4  ;;  %758 = vmatprep.subr.bf16.mxu1 %v1256_v12  ;;  %v1263_v15 = vld [vmem:[#allocation2 + $0x104] ss:$8 sps:$4 sm:$0xff]   ;;  %v1264_v17 = vld [vmem:[#allocation2 + $0x20] ss:$8 sps:$4 sm:$0xff]   ;;  %v1269_v19 = vld [vmem:[#allocation2 + $0x114] ss:$8 sps:$4 sm:$0xff]  }
  0x3f   :  { %178 = vmatprep.subr.bf16.mxu0 %v1249_v5  ;;  %v1267_v20 = vld [vmem:[#allocation2 + $0x110] ss:$8 sps:$4 sm:$0xff]   ;;  %v1271_v22 = vld [vmem:[#allocation2 + $0x44] ss:$8 sps:$4 sm:$0xff]   ;;  %v1273_v24 = vld [vmem:[#allocation2 + $0x120] ss:$8 sps:$4 sm:$0xff]  }
  0x40   :  { %v1270_v21 = vld [vmem:[#allocation2 + $0x30] ss:$8 sps:$4 sm:$0xff]   ;;  %v1275_v23 = vld [vmem:[#allocation2 + $0x124] ss:$8 sps:$4 sm:$0xff]   ;;  %v1276_v25 = vld [vmem:[#allocation2 + $0x40] ss:$8 sps:$4 sm:$0xff]  }
  0x41   :  { %1123 = vmatmul.mubr.msk.bf16.vlgmr.msra.gmra.mrb[0].mxu0 %vm133_vm0, %v64_v6  ;;  %759 = vmatpush1.bf16.msra.mxu1 %v1258_v13  ;;  %v1277_v26 = vld [vmem:[#allocation2 + $0x54] ss:$8 sps:$4 sm:$0xff]   ;;  %v1279_v28 = vld [vmem:[#allocation2 + $0x130] ss:$8 sps:$4 sm:$0xff]   ;;  %v1283_v30 = vld [vmem:[#allocation2 + $0x64] ss:$8 sps:$4 sm:$0xff]  }
  0x42   :  { %179 = vmatpush1.bf16.msra.mxu0 %v1247_v7  ;;  %210 = vmatprep.mubr.bf16.mxu0 %v1502_v0  ;;  %v1281_v27 = vld [vmem:[#allocation2 + $0x134] ss:$8 sps:$4 sm:$0xff]   ;;  %v1282_v29 = vld [vmem:[#allocation2 + $0x50] ss:$8 sps:$4 sm:$0xff]   ;;  %v1287_v31 = vld [vmem:[#allocation2 + $0x144] ss:$8 sps:$4 sm:$0xff]  }
  0x43   :  { %180 = vmatprep.subr.bf16.mxu0 %v1252_v8  ;;  %760 = vmatprep.subr.bf16.mxu1 %v1259_v14  ;;  %v1285_v32 = vld [vmem:[#allocation2 + $0x140] ss:$8 sps:$4 sm:$0xff]   ;;  %v1289_v34 = vld [vmem:[#allocation2 + $0x74] ss:$8 sps:$4 sm:$0xff]   ;;  %v1291_v36 = vld [vmem:[#allocation2 + $0x150] ss:$8 sps:$4 sm:$0xff]  }
  0x44   :  { %v1288_v33 = vld [vmem:[#allocation2 + $0x60] ss:$8 sps:$4 sm:$0xff]   ;;  %v1293_v35 = vld [vmem:[#allocation2 + $0x154] ss:$8 sps:$4 sm:$0xff]   ;;  %v1294_v37 = vld [vmem:[#allocation2 + $0x70] ss:$8 sps:$4 sm:$0xff]  }
  0x45   :  { %761 = vmatpush1.bf16.msra.mxu1 %v1264_v17  ;;  %v1295_v38 = vld [vmem:[#allocation2 + $0x84] ss:$8 sps:$4 sm:$0xff]   ;;  %v1297_v40 = vld [vmem:[#allocation2 + $0x160] ss:$8 sps:$4 sm:$0xff]   ;;  %v1301_v42 = vld [vmem:[#allocation2 + $0x94] ss:$8 sps:$4 sm:$0xff]  }
  0x46   :  { %181 = vmatpush1.bf16.msra.mxu0 %v1250_v9  ;;  %762 = vmatprep.subr.bf16.mxu1 %v1265_v18  ;;  %v1299_v39 = vld [vmem:[#allocation2 + $0x164] ss:$8 sps:$4 sm:$0xff]   ;;  %v1300_v41 = vld [vmem:[#allocation2 + $0x80] ss:$8 sps:$4 sm:$0xff]   ;;  %v1305_v43 = vld [vmem:[#allocation2 + $0x174] ss:$8 sps:$4 sm:$0xff]  }
  0x47   :  { %797 = vmatprep.subr.bf16.mxu0 %v1263_v15  ;;  %v1303_v44 = vld [vmem:[#allocation2 + $0x170] ss:$8 sps:$4 sm:$0xff]   ;;  %v1307_v46 = vld [vmem:[#allocation2 + $0xa4] ss:$8 sps:$4 sm:$0xff]   ;;  %v1309_v48 = vld [vmem:[#allocation2 + $0x180] ss:$8 sps:$4 sm:$0xff]  }
  0x48   :  { %v1306_v45 = vld [vmem:[#allocation2 + $0x90] ss:$8 sps:$4 sm:$0xff]   ;;  %v1311_v47 = vld [vmem:[#allocation2 + $0x184] ss:$8 sps:$4 sm:$0xff]   ;;  %v1312_v49 = vld [vmem:[#allocation2 + $0xa0] ss:$8 sps:$4 sm:$0xff]  }
  0x49   :  { %1124 = vmatmul.mubr.msk.bf16.vlgmr.msra.gmra.mrb[4].mxu0 %vm133_vm0, %v64_v6  ;;  %763 = vmatpush1.bf16.msra.mxu1 %v1270_v21  ;;  %v1313_v50 = vld [vmem:[#allocation2 + $0xb4] ss:$8 sps:$4 sm:$0xff]   ;;  %v1315_v52 = vld [vmem:[#allocation2 + $0x190] ss:$8 sps:$4 sm:$0xff]   ;;  %v1319_v54 = vld [vmem:[#allocation2 + $0xc4] ss:$8 sps:$4 sm:$0xff]  }
  0x4a   :  { %798 = vmatpush1.bf16.msra.mxu0 %v1261_v16  ;;  %764 = vmatprep.subr.bf16.mxu1 %v1271_v22  ;;  %v1317_v51 = vld [vmem:[#allocation2 + $0x194] ss:$8 sps:$4 sm:$0xff]   ;;  %v1318_v53 = vld [vmem:[#allocation2 + $0xb0] ss:$8 sps:$4 sm:$0xff]   ;;  %v1323_v55 = vld [vmem:[#allocation2 + $0x1a4] ss:$8 sps:$4 sm:$0xff]  }
  0x4b   :  { %799 = vmatprep.subr.bf16.mxu0 %v1269_v19  ;;  %v1321_v56 = vld [vmem:[#allocation2 + $0x1a0] ss:$8 sps:$4 sm:$0xff]   ;;  %v1325_v58 = vld [vmem:[#allocation2 + $0xd4] ss:$8 sps:$4 sm:$0xff]   ;;  %v1327_v60 = vld [vmem:[#allocation2 + $0x1b0] ss:$8 sps:$4 sm:$0xff]  }
  0x4c   :  { %v1324_v57 = vld [vmem:[#allocation2 + $0xc0] ss:$8 sps:$4 sm:$0xff]   ;;  %v1329_v59 = vld [vmem:[#allocation2 + $0x1b4] ss:$8 sps:$4 sm:$0xff]   ;;  %v1330_v61 = vld [vmem:[#allocation2 + $0xd0] ss:$8 sps:$4 sm:$0xff]  }
  0x4d   :  { %765 = vmatpush1.bf16.msra.mxu1 %v1276_v25  ;;  %v1331_v62 = vld [vmem:[#allocation2 + $0xe4] ss:$8 sps:$4 sm:$0xff]   ;;  %v1333_v0 = vld [vmem:[#allocation2 + $0x1c0] ss:$8 sps:$4 sm:$0xff]   ;;  %v1337_v2 = vld [vmem:[#allocation2 + $0xf4] ss:$8 sps:$4 sm:$0xff]  }
  0x4e   :  { %800 = vmatpush1.bf16.msra.mxu0 %v1267_v20  ;;  %766 = vmatprep.subr.bf16.mxu1 %v1277_v26  ;;  %v1335_v63 = vld [vmem:[#allocation2 + $0x1c4] ss:$8 sps:$4 sm:$0xff]   ;;  %v1336_v1 = vld [vmem:[#allocation2 + $0xe0] ss:$8 sps:$4 sm:$0xff]   ;;  %v1341_v3 = vld [vmem:[#allocation2 + $0x1d4] ss:$8 sps:$4 sm:$0xff]  }
  0x4f   :  { %801 = vmatprep.subr.bf16.mxu0 %v1275_v23  ;;  %v1339_v4 = vld [vmem:[#allocation2 + $0x1d0] ss:$8 sps:$4 sm:$0xff]   ;;  %v1345_v6 = vld [vmem:[#allocation2 + $0x1e4] ss:$8 sps:$4 sm:$0xff]   ;;  %v1343_v7 = vld [vmem:[#allocation2 + $0x1e0] ss:$8 sps:$4 sm:$0xff]  }
  0x50   :  { %v1342_v5 = vld [vmem:[#allocation2 + $0xf0] ss:$8 sps:$4 sm:$0xff]   ;;  %v1348_v8 = vld [vmem:[#allocation2 + $0x1f4] ss:$8 sps:$4 sm:$0xff]   ;;  %v1603_v11 = vshrl.u32 %v77_v10, 7  ;;  %v1606_v13 = vld [vmem:[#allocation7] sm:$0xff] }
  0x51   :  { %767 = vmatpush1.bf16.msra.mxu1 %v1282_v29  ;;  %v1346_v9 = vld [vmem:[#allocation2 + $0x1f0] ss:$8 sps:$4 sm:$0xff]   ;;  %v1608_v14 = vld [vmem:[#allocation7 + $0x8] sm:$0xff]  ;;  %s1503_s0 = smov [#allocation8]  }
  0x52   :  { %802 = vmatpush1.bf16.msra.mxu0 %v1273_v24  ;;  %768 = vmatprep.subr.bf16.mxu1 %v1283_v30  ;;  %v79_v12 = vsub.s32 0, %v1603_v11  ;;  %v1612_v22 = vld [vmem:[#allocation7 + $0x10] sm:$0xff]  ;;  %v1616_v25 = vld [vmem:[#allocation7 + $0x18] sm:$0xff]  ;;  %s1091_s1 = sshll.u32 %s1503_s0, 4  ;;  %s1092_s1 = int_to_ptr.vmem [resolvable:$true] %s1091_s1 }
  0x53   :  { %803 = vmatprep.subr.bf16.mxu0 %v1281_v27  ;;  %s1443_s27 = scalar_lea.vmem %s1092_s1, 256  ;;  %p1448_p11 = scmp.lt.s32.totalorder %s1092_s1, %s1092_s1 }
  0x54   :  { %v80_v15 = vrot.slane %v1606_v13, %v79_v12  ;;  %v84_v16 = vrot.slane %v1608_v14, %v79_v12  ;;  %v92_v30 = vrot.slane %v1616_v25, %v79_v12  ;;  %p1444_p10 = scmp.ne.s32.totalorder %s1092_s1, %s1443_s27  ;;  %p1449_p12 = scmp.lt.s32.totalorder %s1443_s27, %s1443_s27 }
  0x55   :  { %769 = vmatpush1.bf16.msra.mxu1 %v1288_v33 }
  0x56   :  { %804 = vmatpush1.bf16.msra.mxu0 %v1279_v28  ;;  %770 = vmatprep.subr.bf16.mxu1 %v1289_v34  ;;  %v88_v28 = vrot.slane %v1612_v22, %v79_v12  ;;  %p1450_p13 = por %p1449_p12, %p1448_p11 }
  0x57   :  { %805 = vmatprep.subr.bf16.mxu0 %v1287_v31 }
  0x58   :  { %p1451_p0 = pnand %p1450_p13, %p1444_p10 }
  0x59   :  { %771 = vmatpush1.bf16.msra.mxu1 %v1294_v37 }
  0x5a   :  { %806 = vmatpush1.bf16.msra.mxu0 %v1285_v32  ;;  %772 = vmatprep.subr.bf16.mxu1 %v1295_v38 }
  0x5b   :  { %807 = vmatprep.subr.bf16.mxu0 %v1293_v35 }
  0x5d   :  { %773 = vmatpush1.bf16.msra.mxu1 %v1300_v41 }
  0x5e   :  { %808 = vmatpush1.bf16.msra.mxu0 %v1291_v36  ;;  %774 = vmatprep.subr.bf16.mxu1 %v1301_v42 }
  0x5f   :  { %809 = vmatprep.subr.bf16.mxu0 %v1299_v39 }
  0x61   :  { %775 = vmatpush1.bf16.msra.mxu1 %v1306_v45 }
  0x62   :  { %810 = vmatpush1.bf16.msra.mxu0 %v1297_v40  ;;  %776 = vmatprep.subr.bf16.mxu1 %v1307_v46 }
  0x63   :  { %811 = vmatprep.subr.bf16.mxu0 %v1305_v43 }
  0x65   :  { %777 = vmatpush1.bf16.msra.mxu1 %v1312_v49 }
  0x66   :  { %812 = vmatpush1.bf16.msra.mxu0 %v1303_v44  ;;  %778 = vmatprep.subr.bf16.mxu1 %v1313_v50 }
  0x67   :  { %813 = vmatprep.subr.bf16.mxu0 %v1311_v47 }
  0x69   :  { %779 = vmatpush1.bf16.msra.mxu1 %v1318_v53 }
  0x6a   :  { %814 = vmatpush1.bf16.msra.mxu0 %v1309_v48  ;;  %780 = vmatprep.subr.bf16.mxu1 %v1319_v54 }
  0x6b   :  { %815 = vmatprep.subr.bf16.mxu0 %v1317_v51 }
  0x6d   :  { %781 = vmatpush1.bf16.msra.mxu1 %v1324_v57 }
  0x6e   :  { %816 = vmatpush1.bf16.msra.mxu0 %v1315_v52  ;;  %782 = vmatprep.subr.bf16.mxu1 %v1325_v58 }
  0x6f   :  { %817 = vmatprep.subr.bf16.mxu0 %v1323_v55 }
  0x71   :  { %783 = vmatpush1.bf16.msra.mxu1 %v1330_v61 }
  0x72   :  { %818 = vmatpush1.bf16.msra.mxu0 %v1321_v56  ;;  %784 = vmatprep.subr.bf16.mxu1 %v1331_v62 }
  0x73   :  { %819 = vmatprep.subr.bf16.mxu0 %v1329_v59 }
  0x75   :  { %785 = vmatpush1.bf16.msra.mxu1 %v1336_v1 }
  0x76   :  { %820 = vmatpush1.bf16.msra.mxu0 %v1327_v60  ;;  %786 = vmatprep.subr.bf16.mxu1 %v1337_v2 }
  0x77   :  { %821 = vmatprep.subr.bf16.mxu0 %v1335_v63 }
  0x79   :  { %787 = vmatpush1.bf16.msra.mxu1 %v1342_v5 }
  0x7a   :  { %822 = vmatpush1.bf16.msra.mxu0 %v1333_v0 }
  0x7b   :  { %823 = vmatprep.subr.bf16.mxu0 %v1341_v3 }
  0x7e   :  { %824 = vmatpush1.bf16.msra.mxu0 %v1339_v4 }
  0x7f   :  { %825 = vmatprep.subr.bf16.mxu0 %v1345_v6 }
  0x82   :  { %826 = vmatpush1.bf16.msra.mxu0 %v1343_v7 }
  0x83   :  { %827 = vmatprep.subr.bf16.mxu0 %v1348_v8 }
  0x86   :  { %828 = vmatpush1.bf16.msra.mxu0 %v1346_v9 }
 0x114   :  { %v171_v17 = vpop.f32.mrb[0].mxu0 }
 0x115   :  { %v172_v18 = vadd.f32 %v171_v17, %v80_v15  ;;  %v173_v19 = vpop.f32.mrb[1].mxu0 }
 0x116   :  { %v174_v20 = vadd.f32 %v173_v19, %v84_v16  ;;  %v175_v21 = vpop.f32.mrb[2].mxu0 }
 0x117   :  { %v1614_v23 = vmax.f32 %v172_v18, 0.0  ;;  %v176_v24 = vpop.f32.mrb[3].mxu0 }
 0x118   :  { %v1618_v26 = vmax.f32 %v174_v20, 0.0 }
 0x119   :  { %v223_v27 = vrot.slane %v1614_v23, 4 }
 0x11a   :  { %v229_v29 = vrot.slane %v1618_v26, 4 }
 0x11b   :  { %v224_v31 = vadd.f32 %v223_v27, %v1614_v23 }
 0x11c   :  { %v230_v32 = vadd.f32 %v229_v29, %v1618_v26  ;;  %v212_v33 = vpop.f32.mrb[4].mxu0 }
 0x11d   :  { %v225_v34 = vrot.slane %v224_v31, 2  ;;  %v213_v35 = vadd.f32 %v212_v33, %v88_v28  ;;  %v214_v36 = vpop.f32.mrb[5].mxu0 }
 0x11e   :  { %v231_v37 = vrot.slane %v230_v32, 2  ;;  %v215_v38 = vadd.f32 %v214_v36, %v92_v30  ;;  %v216_v39 = vpop.f32.mrb[6].mxu0 }
 0x11f   :  { %v226_v40 = vadd.f32 %v225_v34, %v224_v31  ;;  %v1626_v41 = vmax.f32 %v213_v35, 0.0  ;;  %v217_v42 = vpop.f32.mrb[7].mxu0 }
 0x120   :  { %v232_v43 = vadd.f32 %v231_v37, %v230_v32  ;;  %v1628_v44 = vmax.f32 %v215_v38, 0.0 }
 0x121   :  { %v227_v45 = vrot.slane %v226_v40, 1  ;;  %v235_v46 = vrot.slane %v1626_v41, 4 }
 0x122   :  { %v233_v47 = vrot.slane %v232_v43, 1  ;;  %v241_v48 = vrot.slane %v1628_v44, 4 }
 0x123   :  { %v228_v49 = vadd.f32 %v227_v45, %v226_v40  ;;  %v236_v50 = vadd.f32 %v235_v46, %v1626_v41 }
 0x124   :  { %v234_v51 = vadd.f32 %v233_v47, %v232_v43  ;;  %v242_v52 = vadd.f32 %v241_v48, %v1628_v44 }
 0x125   :  { %v248_v53 = vmul.f32 0.125, %v228_v49  ;;  %v237_v54 = vrot.slane %v236_v50, 2 }
 0x126   :  { %v249_v55 = vmul.f32 0.125, %v234_v51  ;;  %v243_v56 = vrot.slane %v242_v52, 2 }
 0x127   :  { %v252_v57 = vsub.f32 %v1614_v23, %v248_v53  ;;  %v238_v58 = vadd.f32 %v237_v54, %v236_v50 }
 0x128   :  { %v253_v59 = vsub.f32 %v1618_v26, %v249_v55  ;;  %v244_v60 = vadd.f32 %v243_v56, %v242_v52  ;;  %v322_v52 = vsub.s32 1, %v1603_v11 }
 0x129   :  { %v256_v61 = vmul.f32 %v252_v57, %v252_v57  ;;  %v239_v62 = vrot.slane %v238_v58, 1 }
 0x12a   :  { %v257_v63 = vmul.f32 %v253_v59, %v253_v59  ;;  %v245_v0 = vrot.slane %v244_v60, 1  ;;  %v342_v59 = vsub.s32 2, %v1603_v11 }
 0x12b   :  { %v260_v1 = vrot.slane %v256_v61, 4  ;;  %v240_v2 = vadd.f32 %v239_v62, %v238_v58 }
 0x12c   :  { %v266_v3 = vrot.slane %v257_v63, 4  ;;  %v246_v4 = vadd.f32 %v245_v0, %v244_v60 }
 0x12d   :  { %v261_v5 = vadd.f32 %v260_v1, %v256_v61  ;;  %v250_v6 = vmul.f32 0.125, %v240_v2 }
 0x12e   :  { %v267_v7 = vadd.f32 %v266_v3, %v257_v63  ;;  %v251_v8 = vmul.f32 0.125, %v246_v4 }
 0x12f   :  { %v262_v9 = vrot.slane %v261_v5, 2  ;;  %v254_v10 = vsub.f32 %v1626_v41, %v250_v6 }
 0x130   :  { %v268_v12 = vrot.slane %v267_v7, 2  ;;  %v255_v15 = vsub.f32 %v1628_v44, %v251_v8 }
 0x131   :  { %v263_v16 = vadd.f32 %v262_v9, %v261_v5  ;;  %v258_v17 = vmul.f32 %v254_v10, %v254_v10 }
 0x132   :  { %v269_v18 = vadd.f32 %v268_v12, %v267_v7  ;;  %v259_v19 = vmul.f32 %v255_v15, %v255_v15 }
 0x133   :  { %v264_v20 = vrot.slane %v263_v16, 1  ;;  %v272_v21 = vrot.slane %v258_v17, 4 }
 0x134   :  { %v270_v24 = vrot.slane %v269_v18, 1  ;;  %v278_v27 = vrot.slane %v259_v19, 4 }
 0x135   :  { %v265_v28 = vadd.f32 %v264_v20, %v263_v16  ;;  %v273_v29 = vadd.f32 %v272_v21, %v258_v17 }
 0x136   :  { %v271_v30 = vadd.f32 %v270_v24, %v269_v18  ;;  %v279_v31 = vadd.f32 %v278_v27, %v259_v19 }
 0x137   :  { %v284_v32 = vmul.f32 0.125, %v265_v28  ;;  %v274_v33 = vrot.slane %v273_v29, 2 }
 0x138   :  { %v285_v34 = vmul.f32 0.125, %v271_v30  ;;  %v280_v35 = vrot.slane %v279_v31, 2 }
 0x139   :  { %v288_v36 = vadd.f32 1e-05, %v284_v32  ;;  %v275_v37 = vadd.f32 %v274_v33, %v273_v29  ;;  %v1349_v33 = vld [vmem:[#allocation5 + $0x40] sm:$0xff]  }
 0x13a   :  { %v289_v38 = vadd.f32 1e-05, %v285_v34  ;;  %v281_v39 = vadd.f32 %v280_v35, %v279_v31  ;;  %v1350_v34 = vld [vmem:[#allocation5] sm:$0xff]   ;;  %1205 = vmatprep.subr.bf16.mxu1 %v1349_v33  ;;  %v1354_v35 = vld [vmem:[#allocation5 + $0x10] sm:$0xff]  }
 0x13b   :  { %1365 = vrsqrt.f32 %v288_v36  ;;  %v276_v40 = vrot.slane %v275_v37, 1  ;;  %v1356_v36 = vld [vmem:[#allocation5 + $0x18] sm:$0xff]  }
 0x13c   :  { %1367 = vrsqrt.f32 %v289_v38  ;;  %v282_v42 = vrot.slane %v281_v39, 1  ;;  %v1358_v38 = vld [vmem:[#allocation5 + $0x20] sm:$0xff]  }
 0x13d   :  { %v277_v43 = vadd.f32 %v276_v40, %v275_v37  ;;  %v1357_v37 = vld [vmem:[#allocation5 + $0x60] sm:$0xff]   ;;  %v1360_v40 = vld [vmem:[#allocation5 + $0x28] sm:$0xff]  }
 0x13e   :  { %v283_v45 = vadd.f32 %v282_v42, %v281_v39  ;;  %v1359_v39 = vld [vmem:[#allocation5 + $0x68] sm:$0xff]   ;;  %v1361_v42 = vld [vmem:[#allocation5 + $0x70] sm:$0xff]  }
 0x13f   :  { %v286_v46 = vmul.f32 0.125, %v277_v43  ;;  %v1362_v43 = vld [vmem:[#allocation5 + $0x30] sm:$0xff]  }
 0x140   :  { %v287_v47 = vmul.f32 0.125, %v283_v45  ;;  %v1363_v45 = vld [vmem:[#allocation5 + $0x78] sm:$0xff]  }
 0x141   :  { %v290_v48 = vadd.f32 1e-05, %v286_v46  ;;  %v1364_v46 = vld [vmem:[#allocation5 + $0x38] sm:$0xff]  }
 0x142   :  { %v291_v49 = vadd.f32 1e-05, %v287_v47  ;;  %v430_v47 = vsub.s32 3, %v1603_v11 }
 0x143   :  { %1369 = vrsqrt.f32 %v290_v48 }
 0x144   :  { %1371 = vrsqrt.f32 %v291_v49 }
 0x145   :  { %v1366_v50 = vpop.eup %1365 }
 0x146   :  { %v1368_v51 = vpop.eup %1367  ;;  %v296_v54 = vmul.f32 %v1366_v50, %v1606_v13 }
 0x147   :  { %v297_v56 = vmul.f32 %v1368_v51, %v1608_v14  ;;  %v431_v51 = vrot.slane %v1606_v13, %v430_v47 }
 0x148   :  { %v300_v57 = vmul.f32 %v296_v54, %v248_v53  ;;  %v323_v61 = vrot.slane %v296_v54, %v322_v52  ;;  %v435_v54 = vrot.slane %v1608_v14, %v430_v47 }
 0x149   :  { %v301_v58 = vmul.f32 %v297_v56, %v249_v55  ;;  %v327_v63 = vrot.slane %v297_v56, %v322_v52 }
 0x14a   :  { %v308_v60 = vrot.slane %v300_v57, 7  ;;  %v336_v5 = vmul.f32 %v323_v61, %v1614_v23 }
 0x14b   :  { %v309_v62 = vrot.slane %v301_v58, 7  ;;  %v337_v55 = vmul.f32 %v327_v63, %v1618_v26 }
 0x14c   :  { %v316_v0 = vsub.f32 %v1606_v13, %v308_v60 }
 0x14d   :  { %v1370_v1 = vpop.eup %1369  ;;  %v317_v2 = vsub.f32 %v1608_v14, %v309_v62 }
 0x14e   :  { %v1372_v3 = vpop.eup %1371  ;;  %v298_v4 = vmul.f32 %v1370_v1, %v1612_v22  ;;  %v343_v7 = vrot.slane %v316_v0, %v342_v59 }
 0x14f   :  { %v299_v53 = vmul.f32 %v1372_v3, %v1616_v25  ;;  %v347_v9 = vrot.slane %v317_v2, %v342_v59 }
 0x150   :  { %v302_v10 = vmul.f32 %v298_v4, %v250_v6  ;;  %v356_v12 = vadd.f32 %v343_v7, %v336_v5  ;;  %v331_v18 = vrot.slane %v298_v4, %v322_v52 }
 0x151   :  { %v303_v15 = vmul.f32 %v299_v53, %v251_v8  ;;  %v357_v16 = vadd.f32 %v347_v9, %v337_v55  ;;  %v335_v21 = vrot.slane %v299_v53, %v322_v52 }
 0x152   :  { %v310_v17 = vrot.slane %v302_v10, 7  ;;  %v360_v27 = vpack.c.bf16 %v356_v12, %v356_v12  ;;  %v338_v28 = vmul.f32 %v331_v18, %v1626_v41  ;;  %v1353_v41 = vld [vmem:[#allocation5 + $0x50] sm:$0xff]  }
 0x153   :  { %v311_v19 = vrot.slane %v303_v15, 7  ;;  %v361_v20 = vpack.c.bf16 %v357_v16, %v357_v16  ;;  %v339_v26 = vmul.f32 %v335_v21, %v1628_v44  ;;  %v1355_v44 = vld [vmem:[#allocation5 + $0x58] sm:$0xff]  }
 0x154   :  { %v318_v24 = vsub.f32 %v1612_v22, %v310_v17  ;;  %v1351_v22 = vld [vmem:[#allocation5 + $0x48] sm:$0xff]  }
 0x155   :  { %v319_v23 = vsub.f32 %v1616_v25, %v311_v19  ;;  %788 = vmatprep.mubr.bf16.mxu1 %v361_v20  ;;  %v1352_v25 = vld [vmem:[#allocation5 + $0x8] sm:$0xff]  }
 0x156   :  { %v351_v29 = vrot.slane %v318_v24, %v342_v59  ;;  %789 = vmatmul.mubr.bf16.vlgmr.msra.gmra.mrb[0].mxu1 %v360_v27 }
 0x157   :  { %v355_v6 = vrot.slane %v319_v23, %v342_v59  ;;  %1206 = vmatpush3.bf16.msra.mxu1 %v1350_v34 }
 0x158   :  { %v358_v8 = vadd.f32 %v351_v29, %v338_v28  ;;  %1207 = vmatprep.subr.bf16.mxu1 %v1351_v22 }
 0x159   :  { %v359_v30 = vadd.f32 %v355_v6, %v339_v26 }
 0x15a   :  { %v362_v32 = vpack.c.bf16 %v358_v8, %v358_v8 }
 0x15b   :  { %v363_v31 = vpack.c.bf16 %v359_v30, %v359_v30  ;;  %1208 = vmatpush3.bf16.msra.mxu1 %v1352_v25 }
 0x15c   :  { %1209 = vmatprep.subr.bf16.mxu1 %v1353_v41 }
 0x15d   :  { %829 = vmatprep.mubr.bf16.mxu0 %v363_v31 }
 0x15e   :  { %830 = vmatmul.mubr.bf16.vlgmr.msra.gmra.mrb[8].mxu0 %v362_v32 }
 0x15f   :  { %1210 = vmatpush3.bf16.msra.mxu1 %v1354_v35 }
 0x160   :  { %1211 = vmatprep.subr.bf16.mxu1 %v1355_v44 }
 0x163   :  { %1212 = vmatpush3.bf16.msra.mxu1 %v1356_v36 }
 0x164   :  { %1213 = vmatprep.subr.bf16.mxu1 %v1357_v37 }
 0x167   :  { %1214 = vmatpush3.bf16.msra.mxu1 %v1358_v38  ;;  %v890_v38 = vsub.s32 4, %v1603_v11 }
 0x168   :  { %1215 = vmatprep.subr.bf16.mxu1 %v1359_v39 }
 0x16b   :  { %1216 = vmatpush3.bf16.msra.mxu1 %v1360_v40 }
 0x16c   :  { %1217 = vmatprep.subr.bf16.mxu1 %v1361_v42 }
 0x16f   :  { %1218 = vmatpush3.bf16.msra.mxu1 %v1362_v43 }
 0x170   :  { %1219 = vmatprep.subr.bf16.mxu1 %v1363_v45 }
 0x173   :  { %1220 = vmatpush3.bf16.msra.mxu1 %v1364_v46  ;;  %v900_v46 = vsub.s32 5, %v1603_v11 }
 0x229   :  { %v790_v48 = vpop.f32.mrb[0].mxu1 }
 0x22a   :  { %v792_v49 = vpop.f32.mrb[1].mxu1  ;;  %v791_v56 = vadd.f32 %v790_v48, %v431_v51 }
 0x22b   :  { %v794_v50 = vpop.f32.mrb[2].mxu1  ;;  %v793_v57 = vadd.f32 %v792_v49, %v435_v54 }
 0x22c   :  { %v795_v52 = vpop.f32.mrb[3].mxu1 }
 0x231   :  { %v831_v58 = vpop.f32.mrb[8].mxu0 }
 0x232   :  { %v832_v59 = vadd.f32 %v831_v58, %v791_v56  ;;  %v833_v60 = vpop.f32.mrb[9].mxu0 }
 0x233   :  { %v834_v61 = vadd.f32 %v833_v60, %v793_v57  ;;  %v835_v62 = vpop.f32.mrb[10].mxu0 }
 0x234   :  { %v838_v63 = vmax.f32 %v832_v59, 0.0  ;;  %v836_v0 = vpop.f32.mrb[11].mxu0 }
 0x235   :  { %v839_v1 = vmax.f32 %v834_v61, 0.0 }
 0x236   :  { %v840_v2 = vrot.slane %v838_v63, 4 }
 0x237   :  { %v846_v3 = vrot.slane %v839_v1, 4 }
 0x238   :  { %v841_v4 = vadd.f32 %v840_v2, %v838_v63 }
 0x239   :  { %v847_v5 = vadd.f32 %v846_v3, %v839_v1 }
 0x23a   :  { %v842_v7 = vrot.slane %v841_v4, 2 }
 0x23b   :  { %v848_v53 = vrot.slane %v847_v5, 2 }
 0x23c   :  { %v843_v55 = vadd.f32 %v842_v7, %v841_v4 }
 0x23d   :  { %v849_v9 = vadd.f32 %v848_v53, %v847_v5 }
 0x23e   :  { %v844_v10 = vrot.slane %v843_v55, 1 }
 0x23f   :  { %v850_v12 = vrot.slane %v849_v9, 1 }
 0x240   :  { %v845_v15 = vadd.f32 %v844_v10, %v843_v55 }
 0x241   :  { %v851_v16 = vadd.f32 %v850_v12, %v849_v9 }
 0x242   :  { %v852_v17 = vmul.f32 0.125, %v845_v15 }
 0x243   :  { %v853_v18 = vmul.f32 0.125, %v851_v16 }
 0x244   :  { %v854_v19 = vsub.f32 %v838_v63, %v852_v17 }
 0x245   :  { %v855_v20 = vsub.f32 %v839_v1, %v853_v18 }
 0x246   :  { %v856_v21 = vmul.f32 %v854_v19, %v854_v19 }
 0x247   :  { %v857_v24 = vmul.f32 %v855_v20, %v855_v20 }
 0x248   :  { %v858_v27 = vrot.slane %v856_v21, 4 }
 0x249   :  { %v864_v23 = vrot.slane %v857_v24, 4 }
 0x24a   :  { %v859_v28 = vadd.f32 %v858_v27, %v856_v21 }
 0x24b   :  { %v865_v29 = vadd.f32 %v864_v23, %v857_v24 }
 0x24c   :  { %v860_v26 = vrot.slane %v859_v28, 2 }
 0x24d   :  { %v866_v6 = vrot.slane %v865_v29, 2 }
 0x24e   :  { %v861_v8 = vadd.f32 %v860_v26, %v859_v28 }
 0x24f   :  { %v867_v30 = vadd.f32 %v866_v6, %v865_v29 }
 0x250   :  { %v862_v31 = vrot.slane %v861_v8, 1 }
 0x251   :  { %v868_v32 = vrot.slane %v867_v30, 1 }
 0x252   :  { %v863_v33 = vadd.f32 %v862_v31, %v861_v8 }
 0x253   :  { %v869_v34 = vadd.f32 %v868_v32, %v867_v30 }
 0x254   :  { %v870_v22 = vmul.f32 0.125, %v863_v33 }
 0x255   :  { %v871_v25 = vmul.f32 0.125, %v869_v34 }
 0x256   :  { %v872_v41 = vadd.f32 1e-05, %v870_v22 }
 0x257   :  { %v873_v35 = vadd.f32 1e-05, %v871_v25 }
 0x258   :  { %1373 = vrsqrt.f32 %v872_v41 }
 0x259   :  { %1375 = vrsqrt.f32 %v873_v35 }
 0x262   :  { %v1374_v44 = vpop.eup %1373 }
 0x263   :  { %v1376_v36 = vpop.eup %1375  ;;  %v876_v37 = vmul.f32 %v1374_v44, %v1606_v13 }
 0x264   :  { %v877_v39 = vmul.f32 %v1376_v36, %v1608_v14 }
 0x265   :  { %v878_v40 = vmul.f32 %v876_v37, %v852_v17  ;;  %v891_v45 = vrot.slane %v876_v37, %v890_v38 }
 0x266   :  { %v879_v42 = vmul.f32 %v877_v39, %v853_v18  ;;  %v895_v48 = vrot.slane %v877_v39, %v890_v38 }
 0x267   :  { %v882_v43 = vrot.slane %v878_v40, 7  ;;  %v896_v51 = vmul.f32 %v891_v45, %v838_v63 }
 0x268   :  { %v883_v47 = vrot.slane %v879_v42, 7  ;;  %v897_v54 = vmul.f32 %v895_v48, %v839_v1 }
 0x269   :  { %v886_v49 = vsub.f32 %v1606_v13, %v882_v43 }
 0x26a   :  { %v887_v50 = vsub.f32 %v1608_v14, %v883_v47 }
 0x26b   :  { %v901_v52 = vrot.slane %v886_v49, %v900_v46 }
 0x26c   :  { %v905_v56 = vrot.slane %v887_v50, %v900_v46 }
 0x26d   :  { %v906_v57 = vadd.f32 %v901_v52, %v896_v51 }
 0x26e   :  { %v907_v58 = vadd.f32 %v905_v56, %v897_v54 }
 0x26f   :  { %1082 = vst [vmem:[#allocation8] sm:$0xff] %v906_v57  ;;  %v908_v60 = vpack.c.bf16 %v906_v57, %v906_v57 }
 0x270   :  { %v909_v59 = vpack.c.bf16 %v907_v58, %v907_v58  ;;  %1083 = vst [vmem:[#allocation8 + $0x8] sm:$0xff] %v907_v58 }
 0x272   :  { %1074 = vmatprep.mubr.bf16.mxu1 %v909_v59 }
 0x273   :  { %1075 = vmatmul.mubr.bf16.vlgmr.msra.gmra.mrb[4].mxu1 %v908_v60 }
 0x274   :  { %1454 = shalt.err (!%p1451_p0)
}
 0x275   :  { %s1455_s30 = scalar_lea.hbm %s1692_s5, 256 }
 0x276   :  { %p1456_p1 = scmp.ne.s32.totalorder %s1692_s5, %s1455_s30  ;;  %p1459_p2 = scmp.lt.u32.totalorder %s1455_s30, %s1692_s5 }
 0x278   :  { %p1461_p3 = pnand %p1459_p2, %p1456_p1 }
 0x27a   :  { %1464 = shalt.err (!%p1461_p3)
}
 0x27b   :  { %1094 = dma.vmem_to_hbm [thread:$0]  %s1092_s1, 256, %s1692_s5, [#allocation4]   ;;  %v944_v14 = vsub.s32 6, %v1603_v11 }
 0x27c   :  { %s1504_s12 = smov [#allocation9]  }
 0x27d   :  { %v945_v62 = vrot.slane %v1606_v13, %v944_v14  ;;  %s1101_s13 = sshll.u32 %s1504_s12, 4  ;;  %s1102_s13 = int_to_ptr.vmem [resolvable:$true] %s1101_s13 }
 0x27e   :  { %s1465_s14 = scalar_lea.vmem %s1102_s13, 128  ;;  %p1470_p5 = scmp.lt.s32.totalorder %s1102_s13, %s1102_s13 }
 0x27f   :  { %p1466_p4 = scmp.ne.s32.totalorder %s1102_s13, %s1465_s14  ;;  %p1471_p6 = scmp.lt.s32.totalorder %s1465_s14, %s1465_s14 }
 0x281   :  { %p1472_p7 = por %p1471_p6, %p1470_p5 }
 0x283   :  { %p1473_p8 = pnand %p1472_p7, %p1466_p4 }
 0x346   :  { %v1221_v61 = vpop.f32.mrb[4].mxu1 }
 0x347   :  { %v1222_v63 = vpop.f32.mrb[5].mxu1 }
 0x348   :  { %v1223_v0 = vadd.f32 %v1222_v63, %v1221_v61  ;;  %v1224_v1 = vpop.f32.mrb[6].mxu1 }
 0x349   :  { %v1225_v2 = vpop.f32.mrb[7].mxu1 }
 0x34a   :  { %v1077_v3 = vadd.f32 %v1223_v0, %v945_v62 }
 0x34c   :  { %1084 = vst [vmem:[#allocation9] sm:$0xff] %v1077_v3 }
 0x34d   :  { %1476 = shalt.err (!%p1473_p8)
}
 0x34e   :  { %s1477_s16 = scalar_lea.hbm %s1693_s6, 128 }
 0x34f   :  { %p1478_p9 = scmp.ne.s32.totalorder %s1693_s6, %s1477_s16  ;;  %p1481_p10 = scmp.lt.u32.totalorder %s1477_s16, %s1693_s6 }
 0x351   :  { %p1483_p11 = pnand %p1481_p10, %p1478_p9 }
 0x353   :  { %1486 = shalt.err (!%p1483_p11)
}
 0x354   :  { %1104 = dma.vmem_to_hbm [thread:$0]  %s1102_s13, 128, %s1693_s6, [#allocation10]  }
 0x355   :  { %1491 = dma.done.wait [#allocation4], 256  }
 0x356   :  { %1492 = vsyncadd [#allocation4], 4294967040 }
 0x357   :  { %1493 = dma.done.wait [#allocation10], 128  }
 0x358   :  { %1494 = vsyncadd [#allocation10], 4294967168 }
 0x359   :  { %1111 = vsyncpa [#allocation3], 1 }
 0x35a   :  { %1112 = vsyncpa [#allocation6], 1 }
 0x35b   :  { %1113 = vsyncpa [#allocation4], 1 }
 0x35c   :  { %1114 = vsyncpa [#allocation10], 1 }

</bundles_post_ra>
